<compile_context>
chip_gen: v6e
topology: v6e:2x2x1
jax: 0.10.0
libtpu: 0.0.40
codegen_flags: <defaults>
</compile_context>

<pallas_src>
import functools

import jax
import jax.numpy as jnp
from jax.experimental import pallas as pl
from jax.experimental.pallas import tpu as pltpu

_LANE = 128
_INV_SQRT2 = 0.7071067811865476


def _ffn_kernel(x_ref, w1_ref, b1_ref, w2_ref, b2_ref, o_ref):
    # x_ref : (tm, W)      w1_ref : (W, F)   b1_ref : (1, F)
    # w2_ref: (F, W)       b2_ref : (1, W)   o_ref  : (tm, W)
    x = x_ref[...]  # native dtype straight into the MXU (f32 accumulate below)

    # conv1 (1x1): x @ W1^T (pre-transposed / block-diag-packed)
    h = jnp.dot(x, w1_ref[...], preferred_element_type=jnp.float32)
    h = h + b1_ref[...].astype(jnp.float32)

    # exact GELU (PyTorch F.gelu default): 0.5 * x * (1 + erf(x / sqrt(2)))
    h = 0.5 * h * (1.0 + jax.lax.erf(h * _INV_SQRT2))

    # conv2 (1x1)
    o = jnp.dot(h.astype(w2_ref.dtype), w2_ref[...],
                preferred_element_type=jnp.float32)
    o = o + b2_ref[...].astype(jnp.float32)

    o_ref[...] = o.astype(o_ref.dtype)


def _block_diag(w, fold):
    """(k, n) -> (fold*k, fold*n) block-diagonal replication of w."""
    if fold == 1:
        return w
    k, n = w.shape
    eye = jnp.eye(fold, dtype=w.dtype)
    return jnp.einsum("ab,kn->akbn", eye, w).reshape(fold * k, fold * n)


def _choose_fold(d_hidn):
    """Pack `fold` logical rows per 128-lane row when d_hidn is a narrow
    divisor of the vreg lane width; otherwise no packing."""
    if d_hidn < _LANE and _LANE % d_hidn == 0:
        return _LANE // d_hidn
    return 1


def pack_ffn_weights(w1, b1, w2, b2):
    """Pre-pack PyTorch-layout Conv1d(k=1) weights ONCE at model init.

    w1: (d_ff, d_hidn), b1: (d_ff,), w2: (d_hidn, d_ff), b2: (d_hidn,).
    Returns (w1_big, b1_big, w2_big, b2_big, fold): pre-transposed and
    block-diagonal-replicated lane-dense operands.
    """
    d_ff, d_hidn = w1.shape
    fold = _choose_fold(d_hidn)
    w1_big = _block_diag(jnp.swapaxes(w1, 0, 1), fold)   # (fold*d_hidn, fold*d_ff)
    w2_big = _block_diag(jnp.swapaxes(w2, 0, 1), fold)   # (fold*d_ff, fold*d_hidn)
    b1_big = jnp.tile(b1, fold)[None, :]                 # (1, fold*d_ff)
    b2_big = jnp.tile(b2, fold)[None, :]                 # (1, fold*d_hidn)
    return w1_big, b1_big, w2_big, b2_big, fold


@functools.partial(jax.jit, static_argnames=("fold", "tm"))
def poswise_ffn_packed(x, w1_big, b1_big, w2_big, b2_big, *, fold, tm=512):
    """x: (bs, seq, d_hidn); packed weights from pack_ffn_weights().
    Returns (bs, seq, d_hidn)."""
    bs, seq, d_hidn = x.shape
    M = bs * seq
    width = fold * d_hidn

    # Pad rows up to a multiple of `fold` so they pack cleanly (no-op if aligned;
    # padded rows are row-independent garbage that is sliced off afterwards).
    m_pad = pl.cdiv(M, fold) * fold
    x2d = x.reshape(M, d_hidn)
    if m_pad != M:
        x2d = jnp.pad(x2d, ((0, m_pad - M), (0, 0)))
    mp = m_pad // fold
    xp = x2d.reshape(mp, width)  # bitwise-identical row-major relabel (free)

    # Row tile: as big as possible (each grid step costs ~0.35us); multiple of 8
    # for f32 sublanes unless it is the whole (tiny) problem.
    tm_eff = tm if tm < mp else mp
    if tm_eff < mp:
        tm_eff = max(8, (tm_eff // 8) * 8)
    grid = (pl.cdiv(mp, tm_eff),)

    out = pl.pallas_call(
        _ffn_kernel,
        out_shape=jax.ShapeDtypeStruct((mp, width), x.dtype),
        grid_spec=pltpu.PrefetchScalarGridSpec(
            num_scalar_prefetch=0,
            grid=grid,
            in_specs=[
                pl.BlockSpec((tm_eff, width), lambda i: (i, 0)),   # x tile
                pl.BlockSpec(w1_big.shape, lambda i: (0, 0)),      # W1 (resident)
                pl.BlockSpec(b1_big.shape, lambda i: (0, 0)),      # b1
                pl.BlockSpec(w2_big.shape, lambda i: (0, 0)),      # W2 (resident)
                pl.BlockSpec(b2_big.shape, lambda i: (0, 0)),      # b2
            ],
            out_specs=pl.BlockSpec((tm_eff, width), lambda i: (i, 0)),
        ),
        compiler_params=pltpu.CompilerParams(
            dimension_semantics=("parallel",)),  # M axis shards across TCs (v7x)
    )(xp, w1_big, b1_big, w2_big, b2_big)

    out = out.reshape(m_pad, d_hidn)
    if m_pad != M:
        out = out[:M]
    return out.reshape(bs, seq, d_hidn)


def poswise_ffn(x, w1, b1, w2, b2, *, tm=512):
    """Convenience entry taking raw PyTorch-layout weights. For production,
    call pack_ffn_weights once at init and reuse poswise_ffn_packed."""
    w1_big, b1_big, w2_big, b2_big, fold = pack_ffn_weights(w1, b1, w2, b2)
    return poswise_ffn_packed(x, w1_big, b1_big, w2_big, b2_big, fold=fold, tm=tm)


def _reference(x, w1, b1, w2, b2):
    h = jnp.einsum("bsd,fd->bsf", x, w1) + b1
    h = 0.5 * h * (1.0 + jax.lax.erf(h / jnp.sqrt(2.0)))
    o = jnp.einsum("bsf,df->bsd", h, w2) + b2
    return o


if __name__ == "__main__":
    # config: d_hidn=32, d_ff=64, dropout treated as eval-mode identity
    bs, seq, d_hidn, d_ff = 2, 8, 32, 64

    key = jax.random.PRNGKey(0)
    kx, kw1, kb1, kw2, kb2 = jax.random.split(key, 5)

    x = jax.random.normal(kx, (bs, seq, d_hidn), dtype=jnp.float32)
    # Conv1d(in=d_hidn, out=d_ff, k=1) weight shape (d_ff, d_hidn, 1) -> squeeze k
    w1 = jax.random.normal(kw1, (d_ff, d_hidn), dtype=jnp.float32) * 0.05
    b1 = jax.random.normal(kb1, (d_ff,), dtype=jnp.float32) * 0.05
    # Conv1d(in=d_ff, out=d_hidn, k=1)
    w2 = jax.random.normal(kw2, (d_hidn, d_ff), dtype=jnp.float32) * 0.05
    b2 = jax.random.normal(kb2, (d_hidn,), dtype=jnp.float32) * 0.05

    # Pack weights once (what a real model would do at init), then run the kernel.
    w1_big, b1_big, w2_big, b2_big, fold = pack_ffn_weights(w1, b1, w2, b2)
    out = poswise_ffn_packed(x, w1_big, b1_big, w2_big, b2_big, fold=fold, tm=512)
    out = jax.block_until_ready(out)

    ref = _reference(x, w1, b1, w2, b2)
    assert out.shape == (bs, seq, d_hidn)
    assert jnp.allclose(out, ref, atol=1e-5, rtol=1e-5), "mismatch vs reference"

    print("KERNEL_OK")
</pallas_src>

<mosaic_0001>
module attributes {stable_mosaic.version = 11 : i64} {
  func.func @_ffn_kernel(%arg0: i32, %arg1: memref<4x128xf32, #tpu.memory_space<vmem>>, %arg2: memref<128x256xf32, #tpu.memory_space<vmem>>, %arg3: memref<1x256xf32, #tpu.memory_space<vmem>>, %arg4: memref<256x128xf32, #tpu.memory_space<vmem>>, %arg5: memref<1x128xf32, #tpu.memory_space<vmem>>, %arg6: memref<4x128xf32, #tpu.memory_space<vmem>>) attributes {dimension_semantics = [#tpu.dimension_semantics<parallel>], iteration_bounds = array<i64: 1>, scalar_prefetch = 0 : i64, scratch_operands = 0 : i64, tpu.core_type = #tpu.core_type<tc>, window_params = [{transform_indices = @transform_0, window_bounds = array<i64: 4, 128>}, {pipeline_mode = #tpu.pipeline_mode<synchronous>, transform_indices = @transform_1, window_bounds = array<i64: 128, 256>}, {pipeline_mode = #tpu.pipeline_mode<synchronous>, transform_indices = @transform_2, window_bounds = array<i64: 1, 256>}, {pipeline_mode = #tpu.pipeline_mode<synchronous>, transform_indices = @transform_3, window_bounds = array<i64: 256, 128>}, {pipeline_mode = #tpu.pipeline_mode<synchronous>, transform_indices = @transform_4, window_bounds = array<i64: 1, 128>}, {transform_indices = @transform_5, window_bounds = array<i64: 4, 128>}]} {
    %c0 = arith.constant 0 : index
    %c0_0 = arith.constant 0 : index
    %0 = vector.load %arg1[%c0, %c0_0] : memref<4x128xf32, #tpu.memory_space<vmem>>, vector<4x128xf32>
    %c0_1 = arith.constant 0 : index
    %c0_2 = arith.constant 0 : index
    %1 = vector.load %arg2[%c0_1, %c0_2] : memref<128x256xf32, #tpu.memory_space<vmem>>, vector<128x256xf32>
    %cst = arith.constant dense<0.000000e+00> : vector<4x256xf32>
    %2 = tpu.matmul %0, %1, %cst {dimension_numbers = #tpu.dot_dimension_numbers<[1], [0], [0], [1], [0, 0, 1, 1], [], []>} : vector<4x128xf32>, vector<128x256xf32>, vector<4x256xf32> -> vector<4x256xf32>
    %c0_3 = arith.constant 0 : index
    %c0_4 = arith.constant 0 : index
    %3 = vector.load %arg3[%c0_3, %c0_4] : memref<1x256xf32, #tpu.memory_space<vmem>>, vector<1x256xf32>
    %4 = vector.broadcast %3 : vector<1x256xf32> to vector<4x256xf32>
    %5 = arith.addf %2, %4 : vector<4x256xf32>
    %cst_5 = arith.constant 5.000000e-01 : f32
    %6 = vector.broadcast %cst_5 : f32 to vector<4x256xf32>
    %7 = arith.mulf %6, %5 : vector<4x256xf32>
    %cst_6 = arith.constant 0.707106769 : f32
    %8 = vector.broadcast %cst_6 : f32 to vector<4x256xf32>
    %9 = arith.mulf %5, %8 : vector<4x256xf32>
    %10 = math.erf %9 : vector<4x256xf32>
    %cst_7 = arith.constant 1.000000e+00 : f32
    %11 = vector.broadcast %cst_7 : f32 to vector<4x256xf32>
    %12 = arith.addf %11, %10 : vector<4x256xf32>
    %13 = arith.mulf %7, %12 : vector<4x256xf32>
    %c0_8 = arith.constant 0 : index
    %c0_9 = arith.constant 0 : index
    %14 = vector.load %arg4[%c0_8, %c0_9] : memref<256x128xf32, #tpu.memory_space<vmem>>, vector<256x128xf32>
    %cst_10 = arith.constant dense<0.000000e+00> : vector<4x128xf32>
    %15 = tpu.matmul %13, %14, %cst_10 {dimension_numbers = #tpu.dot_dimension_numbers<[1], [0], [0], [1], [0, 0, 1, 1], [], []>} : vector<4x256xf32>, vector<256x128xf32>, vector<4x128xf32> -> vector<4x128xf32>
    %c0_11 = arith.constant 0 : index
    %c0_12 = arith.constant 0 : index
    %16 = vector.load %arg5[%c0_11, %c0_12] : memref<1x128xf32, #tpu.memory_space<vmem>>, vector<1x128xf32>
    %17 = vector.broadcast %16 : vector<1x128xf32> to vector<4x128xf32>
    %18 = arith.addf %15, %17 : vector<4x128xf32>
    %c0_13 = arith.constant 0 : index
    %c0_14 = arith.constant 0 : index
    %19 = vector.load %arg6[%c0_13, %c0_14] : memref<4x128xf32, #tpu.memory_space<vmem>>, vector<4x128xf32>
    tpu.vector_store %arg6[%c0_13, %c0_14], %18 {strides = array<i32>} : memref<4x128xf32, #tpu.memory_space<vmem>>, vector<4x128xf32>,
    return
  }
  func.func @transform_0(%arg0: i32) -> (i32, i32) {
    %c0_i32 = arith.constant 0 : i32
    %c0_i32_0 = arith.constant 0 : i32
    return %arg0, %c0_i32 : i32, i32
  }
  func.func @transform_1(%arg0: i32) -> (i32, i32) {
    %c0_i32 = arith.constant 0 : i32
    %c0_i32_0 = arith.constant 0 : i32
    %c0_i32_1 = arith.constant 0 : i32
    return %c0_i32, %c0_i32_0 : i32, i32
  }
  func.func @transform_2(%arg0: i32) -> (i32, i32) {
    %c0_i32 = arith.constant 0 : i32
    %c0_i32_0 = arith.constant 0 : i32
    %c0_i32_1 = arith.constant 0 : i32
    return %c0_i32, %c0_i32_0 : i32, i32
  }
  func.func @transform_3(%arg0: i32) -> (i32, i32) {
    %c0_i32 = arith.constant 0 : i32
    %c0_i32_0 = arith.constant 0 : i32
    %c0_i32_1 = arith.constant 0 : i32
    return %c0_i32, %c0_i32_0 : i32, i32
  }
  func.func @transform_4(%arg0: i32) -> (i32, i32) {
    %c0_i32 = arith.constant 0 : i32
    %c0_i32_0 = arith.constant 0 : i32
    %c0_i32_1 = arith.constant 0 : i32
    return %c0_i32, %c0_i32_0 : i32, i32
  }
  func.func @transform_5(%arg0: i32) -> (i32, i32) {
    %c0_i32 = arith.constant 0 : i32
    %c0_i32_0 = arith.constant 0 : i32
    return %arg0, %c0_i32 : i32, i32
  }
}

</mosaic_0001>

<bundles_post_ra>
// kernel: poswise_ffn_packed.1
= control target key start
LH: loop header
LB: loop body
LE: loop exit
PB: predicated region body
PF: predicated region fallthrough
CT: control target
= control target key end

     0   :  { %10 = vsyncpa [#allocation3], 0  ;;  %s436_s0 = inlined_call_operand.vmem [shape: f32[4,128], index: 0, kind: input, shape index: {}]   ;;  %s437_s1 = inlined_call_operand.hbm [shape: f32[128,256], index: 1, kind: input, shape index: {}]   ;;  %s438_s2 = inlined_call_operand.vmem [shape: f32[1,256], index: 2, kind: input, shape index: {}]   ;;  %s439_s3 = inlined_call_operand.hbm [shape: f32[256,128], index: 3, kind: input, shape index: {}]   ;;  %s440_s4 = inlined_call_operand.vmem [shape: f32[1,128], index: 4, kind: input, shape index: {}]   ;;  %s441_s5 = inlined_call_operand.vmem [shape: f32[4,128], index: 5, kind: output, shape index: {}]  }
   0x1   :  { %11 = vsyncpa [#allocation5], 0  ;;  %s381_s18 = smov [#allocation2]  }
   0x2   :  { %s19_s19 = sshll.u32 %s381_s18, 4  ;;  %s20_s19 = int_to_ptr.vmem [resolvable:$true] %s19_s19 }
   0x3   :  { %s345_s20 = scalar_lea.vmem %s20_s19, 4096  ;;  %p350_p1 = scmp.lt.s32.totalorder %s20_s19, %s20_s19 }
   0x4   :  { %p346_p0 = scmp.ne.s32.totalorder %s20_s19, %s345_s20  ;;  %p351_p2 = scmp.lt.s32.totalorder %s345_s20, %s345_s20 }
   0x6   :  { %p352_p3 = por %p351_p2, %p350_p1 }
   0x8   :  { %p353_p4 = pnand %p352_p3, %p346_p0 }
   0xa   :  { %356 = shalt.err (!%p353_p4)
}
   0xb   :  { %s382_s21 = smov 256   ;;  %s383_s22 = smov 16  }
   0xc   :  { %25 = dma.hbm_to_vmem [thread:$0]  %s437_s1, 4096, %s20_s19, [#allocation3], %s382_s21, %s382_s21, %s383_s22  }
   0xd   :  { %s384_s25 = smov [#allocation4]  }
   0xe   :  { %s33_s26 = sshll.u32 %s384_s25, 4  ;;  %s34_s26 = int_to_ptr.vmem [resolvable:$true] %s33_s26 }
   0xf   :  { %s365_s27 = scalar_lea.vmem %s34_s26, 4096  ;;  %p370_p6 = scmp.lt.s32.totalorder %s34_s26, %s34_s26 }
  0x10   :  { %p366_p5 = scmp.ne.s32.totalorder %s34_s26, %s365_s27  ;;  %p371_p7 = scmp.lt.s32.totalorder %s365_s27, %s365_s27 }
  0x12   :  { %p372_p8 = por %p371_p7, %p370_p6 }
  0x14   :  { %p373_p9 = pnand %p372_p8, %p366_p5 }
  0x16   :  { %376 = shalt.err (!%p373_p9)
}
  0x17   :  { %s385_s28 = smov 128   ;;  %s386_s29 = smov 8  }
  0x18   :  { %39 = dma.hbm_to_vmem [thread:$0]  %s439_s3, 4096, %s34_s26, [#allocation5], %s385_s28, %s385_s28, %s386_s29  }
  0x19   :  { %377 = dma.done.wait [#allocation3], 4096  }
  0x1a   :  { %378 = vsyncadd [#allocation3], 4294963200 }
  0x1b   :  { %379 = dma.done.wait [#allocation5], 4096  }
  0x1c   :  { %380 = vsyncadd [#allocation5], 4294963200  ;;  %v387_v0 = vmov 0.0   ;;  %v80_v1 = vld [vmem:[#allocation2 + $0xf8] sm:$0xff]  ;;  %v79_v2 = vld [vmem:[#allocation2 + $0xf0] sm:$0xff] }
  0x1d   :  { %157 = vmatprep.mubr.f32.mxu0 %v387_v0  ;;  %v78_v3 = vld [vmem:[#allocation2 + $0xe8] sm:$0xff]  ;;  %93 = vmatprep.subr.mxu0 %v80_v1  ;;  %v77_v4 = vld [vmem:[#allocation2 + $0xe0] sm:$0xff]  ;;  %v76_v5 = vld [vmem:[#allocation2 + $0xd8] sm:$0xff] }
  0x1e   :  { %94 = vmatpush1.msra.mxu0 %v79_v2  ;;  %v75_v6 = vld [vmem:[#allocation2 + $0xd0] sm:$0xff]  ;;  %v74_v7 = vld [vmem:[#allocation2 + $0xc8] sm:$0xff]  ;;  %v73_v8 = vld [vmem:[#allocation2 + $0xc0] sm:$0xff]  ;;  %v83_v2 = vlaneseq }
  0x1f   :  { %95 = vmatprep.subr.mxu0 %v78_v3  ;;  %v72_v9 = vld [vmem:[#allocation2 + $0xb8] sm:$0xff]  ;;  %v71_v10 = vld [vmem:[#allocation2 + $0xb0] sm:$0xff]  ;;  %v70_v11 = vld [vmem:[#allocation2 + $0xa8] sm:$0xff] }
  0x20   :  { %96 = vmatpush1.msra.mxu0 %v77_v4  ;;  %v69_v12 = vld [vmem:[#allocation2 + $0xa0] sm:$0xff]  ;;  %v68_v13 = vld [vmem:[#allocation2 + $0x98] sm:$0xff]  ;;  %v67_v14 = vld [vmem:[#allocation2 + $0x90] sm:$0xff]  ;;  %v84_v3 = vshrl.u32 %v83_v2, 7 }
  0x21   :  { %97 = vmatprep.subr.mxu0 %v76_v5  ;;  %v205_v15 = vld [vmem:[#allocation4 + $0xf8] sm:$0xff]  ;;  %v204_v17 = vld [vmem:[#allocation4 + $0xf0] sm:$0xff]  ;;  %v66_v18 = vld [vmem:[#allocation2 + $0x88] sm:$0xff] }
  0x22   :  { %98 = vmatpush1.msra.mxu0 %v75_v6  ;;  %v189_v16 = vld [vmem:[#allocation4 + $0x78] sm:$0xff]  ;;  %291 = vmatprep.subr.mxu1 %v205_v15  ;;  %v188_v19 = vld [vmem:[#allocation4 + $0x70] sm:$0xff]  ;;  %v65_v20 = vld [vmem:[#allocation2 + $0x80] sm:$0xff]  ;;  %v85_v4 = vsub.s32 0, %v84_v3  ;;  %v89_v6 = vsub.s32 1, %v84_v3 }
  0x23   :  { %99 = vmatprep.subr.mxu0 %v74_v7  ;;  %292 = vmatpush3.msra.mxu1 %v189_v16  ;;  %v203_v21 = vld [vmem:[#allocation4 + $0xe8] sm:$0xff]  ;;  %v64_v22 = vld [vmem:[#allocation2 + $0x78] sm:$0xff]  ;;  %v63_v24 = vld [vmem:[#allocation2 + $0x70] sm:$0xff] }
  0x24   :  { %100 = vmatpush1.msra.mxu0 %v73_v8  ;;  %293 = vmatprep.subr.mxu1 %v204_v17  ;;  %v187_v23 = vld [vmem:[#allocation4 + $0x68] sm:$0xff]  ;;  %v61_v26 = vld [vmem:[#allocation2 + $0x60] sm:$0xff]  ;;  %v60_v27 = vld [vmem:[#allocation2 + $0x58] sm:$0xff] }
  0x25   :  { %101 = vmatprep.subr.mxu0 %v72_v9  ;;  %294 = vmatpush3.msra.mxu1 %v188_v19  ;;  %v62_v25 = vld [vmem:[#allocation2 + $0x68] sm:$0xff]  ;;  %v59_v28 = vld [vmem:[#allocation2 + $0x50] sm:$0xff]  ;;  %v57_v30 = vld [vmem:[#allocation2 + $0x40] sm:$0xff] }
  0x26   :  { %102 = vmatpush1.msra.mxu0 %v71_v10  ;;  %295 = vmatprep.subr.mxu1 %v203_v21  ;;  %v58_v29 = vld [vmem:[#allocation2 + $0x48] sm:$0xff]  ;;  %v56_v31 = vld [vmem:[#allocation2 + $0x38] sm:$0xff]  ;;  %v55_v32 = vld [vmem:[#allocation2 + $0x30] sm:$0xff] }
  0x27   :  { %103 = vmatprep.subr.mxu0 %v70_v11  ;;  %296 = vmatpush3.msra.mxu1 %v187_v23  ;;  %v54_v33 = vld [vmem:[#allocation2 + $0x28] sm:$0xff]  ;;  %v53_v34 = vld [vmem:[#allocation2 + $0x20] sm:$0xff]  ;;  %v52_v35 = vld [vmem:[#allocation2 + $0x18] sm:$0xff] }
  0x28   :  { %104 = vmatpush1.msra.mxu0 %v69_v12  ;;  %v51_v36 = vld [vmem:[#allocation2 + $0x10] sm:$0xff]  ;;  %v50_v37 = vld [vmem:[#allocation2 + $0x8] sm:$0xff]  ;;  %v49_v38 = vld [vmem:[#allocation2] sm:$0xff] }
  0x29   :  { %105 = vmatprep.subr.mxu0 %v68_v13  ;;  %v48_v39 = vld [vmem:[%s436_s0] sm:$0xf]  ;;  %v201_v42 = vld [vmem:[#allocation4 + $0xd8] sm:$0xff]  ;;  %v200_v44 = vld [vmem:[#allocation4 + $0xd0] sm:$0xff] }
  0x2a   :  { %106 = vmatpush1.msra.mxu0 %v67_v14  ;;  %v202_v40 = vld [vmem:[#allocation4 + $0xe0] sm:$0xff]  ;;  %v185_v43 = vld [vmem:[#allocation4 + $0x58] sm:$0xff]  ;;  %v184_v45 = vld [vmem:[#allocation4 + $0x50] sm:$0xff] }
  0x2b   :  { %107 = vmatprep.subr.mxu0 %v66_v18  ;;  %297 = vmatprep.subr.mxu1 %v202_v40  ;;  %v186_v41 = vld [vmem:[#allocation4 + $0x60] sm:$0xff]  ;;  %v199_v46 = vld [vmem:[#allocation4 + $0xc8] sm:$0xff]  ;;  %v197_v50 = vld [vmem:[#allocation4 + $0xb8] sm:$0xff] }
  0x2c   :  { %108 = vmatpush1.msra.mxu0 %v65_v20  ;;  %298 = vmatpush3.msra.mxu1 %v186_v41  ;;  %v183_v47 = vld [vmem:[#allocation4 + $0x48] sm:$0xff]  ;;  %v198_v48 = vld [vmem:[#allocation4 + $0xc0] sm:$0xff]  ;;  %v181_v51 = vld [vmem:[#allocation4 + $0x38] sm:$0xff] }
  0x2d   :  { %109 = vmatprep.subr.mxu0 %v64_v22  ;;  %299 = vmatprep.subr.mxu1 %v201_v42  ;;  %v182_v49 = vld [vmem:[#allocation4 + $0x40] sm:$0xff]  ;;  %v196_v52 = vld [vmem:[#allocation4 + $0xb0] sm:$0xff]  ;;  %v195_v54 = vld [vmem:[#allocation4 + $0xa8] sm:$0xff] }
  0x2e   :  { %110 = vmatpush1.msra.mxu0 %v63_v24  ;;  %300 = vmatpush3.msra.mxu1 %v185_v43  ;;  %v180_v53 = vld [vmem:[#allocation4 + $0x30] sm:$0xff]  ;;  %v179_v55 = vld [vmem:[#allocation4 + $0x28] sm:$0xff]  ;;  %v194_v56 = vld [vmem:[#allocation4 + $0xa0] sm:$0xff] }
  0x2f   :  { %111 = vmatprep.subr.mxu0 %v62_v25  ;;  %301 = vmatprep.subr.mxu1 %v200_v44  ;;  %v178_v57 = vld [vmem:[#allocation4 + $0x20] sm:$0xff]  ;;  %v193_v58 = vld [vmem:[#allocation4 + $0x98] sm:$0xff]  ;;  %v192_v60 = vld [vmem:[#allocation4 + $0x90] sm:$0xff] }
  0x30   :  { %112 = vmatpush1.msra.mxu0 %v61_v26  ;;  %302 = vmatpush3.msra.mxu1 %v184_v45  ;;  %v177_v59 = vld [vmem:[#allocation4 + $0x18] sm:$0xff]  ;;  %v176_v61 = vld [vmem:[#allocation4 + $0x10] sm:$0xff]  ;;  %v191_v62 = vld [vmem:[#allocation4 + $0x88] sm:$0xff] }
  0x31   :  { %113 = vmatprep.subr.mxu0 %v60_v27  ;;  %303 = vmatprep.subr.mxu1 %v199_v46  ;;  %v175_v63 = vld [vmem:[#allocation4 + $0x8] sm:$0xff]  ;;  %v190_v0 = vld [vmem:[#allocation4 + $0x80] sm:$0xff] }
  0x32   :  { %114 = vmatpush1.msra.mxu0 %v59_v28  ;;  %304 = vmatpush3.msra.mxu1 %v183_v47  ;;  %v174_v1 = vld [vmem:[#allocation4] sm:$0xff] }
  0x33   :  { %115 = vmatprep.subr.mxu0 %v58_v29  ;;  %305 = vmatprep.subr.mxu1 %v198_v48  ;;  %v81_v5 = vld [vmem:[%s438_s2] sm:$0x3] }
  0x34   :  { %116 = vmatpush1.msra.mxu0 %v57_v30  ;;  %306 = vmatpush3.msra.mxu1 %v182_v49  ;;  %v86_v7 = vrot.slane %v81_v5, %v85_v4  ;;  %v90_v8 = vrot.slane %v81_v5, %v89_v6  ;;  %v290_v24 = vld [vmem:[%s440_s4] ss:$0 sm:$0xff] }
  0x35   :  { %117 = vmatprep.subr.mxu0 %v56_v31  ;;  %307 = vmatprep.subr.mxu1 %v197_v50 }
  0x36   :  { %118 = vmatpush1.msra.mxu0 %v55_v32  ;;  %308 = vmatpush3.msra.mxu1 %v181_v51 }
  0x37   :  { %119 = vmatprep.subr.mxu0 %v54_v33  ;;  %309 = vmatprep.subr.mxu1 %v196_v52 }
  0x38   :  { %120 = vmatpush1.msra.mxu0 %v53_v34  ;;  %310 = vmatpush3.msra.mxu1 %v180_v53 }
  0x39   :  { %121 = vmatprep.subr.mxu0 %v52_v35  ;;  %311 = vmatprep.subr.mxu1 %v195_v54 }
  0x3a   :  { %122 = vmatpush1.msra.mxu0 %v51_v36  ;;  %312 = vmatpush3.msra.mxu1 %v179_v55 }
  0x3b   :  { %123 = vmatprep.subr.mxu0 %v50_v37  ;;  %313 = vmatprep.subr.mxu1 %v194_v56 }
  0x3c   :  { %124 = vmatpush1.msra.mxu0 %v49_v38  ;;  %314 = vmatpush3.msra.mxu1 %v178_v57 }
  0x3d   :  { %158 = vmatmul.mubr.f32.vlgmr.msra.gmra.mxu0 %v48_v39  ;;  %315 = vmatprep.subr.mxu1 %v193_v58 }
  0x3e   :  { %316 = vmatpush3.msra.mxu1 %v177_v59 }
  0x3f   :  { %317 = vmatprep.subr.mxu1 %v192_v60 }
  0x40   :  { %318 = vmatpush3.msra.mxu1 %v176_v61 }
  0x41   :  { %319 = vmatprep.subr.mxu1 %v191_v62 }
  0x42   :  { %320 = vmatpush3.msra.mxu1 %v175_v63 }
  0x43   :  { %321 = vmatprep.subr.mxu1 %v190_v0 }
  0x44   :  { %322 = vmatpush3.msra.mxu1 %v174_v1 }
  0xfd   :  { %v159_v9 = vpop.f32.mrf.mxu0 }
  0xfe   :  { %v160_v10 = vadd.f32 %v159_v9, %v86_v7 }
  0xff   :  { %v161_v11 = vpop.f32.mrf.mxu0 }
 0x100   :  { %v166_v12 = vmul.f32 0.70710677, %v160_v10  ;;  %v162_v13 = vadd.f32 %v161_v11, %v90_v8  ;;  %v164_v20 = vmul.f32 0.5, %v160_v10 }
 0x102   :  { %333 = verf.f32 %v166_v12  ;;  %v167_v14 = vmul.f32 0.70710677, %v162_v13  ;;  %v165_v18 = vmul.f32 0.5, %v162_v13 }
 0x104   :  { %335 = verf.f32 %v167_v14 }
 0x10f   :  { %v334_v15 = vpop.eup %333 }
 0x110   :  { %v170_v17 = vadd.f32 1.0, %v334_v15 }
 0x111   :  { %v336_v16 = vpop.eup %335 }
 0x112   :  { %v171_v19 = vadd.f32 1.0, %v336_v16  ;;  %v172_v22 = vmul.f32 %v170_v17, %v164_v20 }
 0x114   :  { %v173_v21 = vmul.f32 %v171_v19, %v165_v18 }
 0x116   :  { %277 = vmatprep.mubr.f32.mxu1 %v173_v21 }
 0x117   :  { %278 = vmatmul.mubr.f32.vlgmr.msra.gmra.mxu1 %v172_v22 }
 0x1d7   :  { %v323_v23 = vpop.f32.mrf.mxu1 }
 0x1d9   :  { %v324_v25 = vpop.f32.mrf.mxu1 }
 0x1da   :  { %v325_v26 = vadd.f32 %v324_v25, %v323_v23 }
 0x1dc   :  { %v280_v27 = vadd.f32 %v325_v26, %v290_v24 }
 0x1de   :  { %283 = vst [vmem:[%s441_s5] sm:$0xf] %v280_v27 }
 0x1df   :  { %288 = vsyncpa [#allocation3], 1 }
 0x1e0   :  { %289 = vsyncpa [#allocation5], 1 }

</bundles_post_ra>
